<compile_context>
chip_gen: v6e
topology: v6e:2x2x1
jax: 0.10.0
libtpu: 0.0.40
codegen_flags: <defaults>
</compile_context>

<pallas_src>
import math
from functools import partial

import numpy as np
import jax
import jax.numpy as jnp
from jax.experimental import pallas as pl
from jax.experimental.pallas import tpu as pltpu

LATENT_DIM = 2
N_INPUT = 5 * 4 + 4 + 4 + 4 + 4 + 1   # = 37 (features = mean,std,max,min,entropy)

# Output slab lane layout: [ff 0:37 | lat 37:39 | cls 39:43 | pad | xrec 64:101 | pad]
_FF_OFF, _LAT_OFF, _CLS_OFF, _XREC_OFF, _SLAB = 0, 37, 39, 64, 128


def _round_up(x, m):
    return ((x + m - 1) // m) * m


# ---------------------------------------------------------------------------
# Pallas kernel
# ---------------------------------------------------------------------------
def ensemble_kernel(pf_ref, wenc_ref, w2f_ref, w3f_ref, misc_ref, out_ref, *,
                    fuse256):
    f32 = jnp.float32
    bf16 = jnp.bfloat16

    pf = pf_ref[...]                                    # [TB, 20] raw_probs (f32)
    tb = pf.shape[0]

    # ----- ensemble statistics over the 5 base models (elementwise VPU, f32) ---
    ps = [pf[:, 4 * i:4 * i + 4] for i in range(5)]
    mean_p = (ps[0] + ps[1] + ps[2] + ps[3] + ps[4]) * 0.2
    d0 = ps[0] - mean_p; d1 = ps[1] - mean_p; d2 = ps[2] - mean_p
    d3 = ps[3] - mean_p; d4 = ps[4] - mean_p
    var_p = (d0 * d0 + d1 * d1 + d2 * d2 + d3 * d3 + d4 * d4) * 0.25  # unbiased
    std_p = jnp.sqrt(var_p)
    max_p = jnp.maximum(jnp.maximum(jnp.maximum(ps[0], ps[1]),
                                    jnp.maximum(ps[2], ps[3])), ps[4])
    min_p = jnp.minimum(jnp.minimum(jnp.minimum(ps[0], ps[1]),
                                    jnp.minimum(ps[2], ps[3])), ps[4])
    ent = -jnp.sum(mean_p * jnp.log(jnp.maximum(mean_p, 1e-10)),
                   axis=1, keepdims=True)               # [TB, 1]

    # final_features, padded to a full 128-lane vreg (lanes 37.. are zero)
    ff = jnp.concatenate(
        [pf, mean_p, std_p, max_p, min_p, ent,
         jnp.zeros((tb, 128 - N_INPUT), f32)], axis=1)  # [TB, 128]

    # bf16 operands on the MXU, f32 accumulate, f32 bias add on the VPU.
    def mxu(x, w, b):
        return jnp.dot(x.astype(bf16), w, preferred_element_type=f32) + b

    # ----- encoder 37 -> 64 -> 32 (MXU) -----
    h = jnp.maximum(mxu(ff, wenc_ref[0], misc_ref[5:6, 0:128]), 0.0)
    h = jnp.maximum(mxu(h, wenc_ref[1], misc_ref[6:7, 0:128]), 0.0)

    # encoder L3 (32 -> 2) on the VPU/XLU: broadcast mult + cross-lane reduce.
    we3 = misc_ref[8:10, 0:128]                          # (2, 128) f32
    r0 = jnp.sum(h * we3[0:1, :], axis=1, keepdims=True)
    r1 = jnp.sum(h * we3[1:2, :], axis=1, keepdims=True)
    lat = jax.nn.sigmoid(jnp.concatenate([r0, r1], axis=1)
                         + misc_ref[7:8, 0:2])           # [TB, 2]

    # Fused first layers off the 2-wide latent: pure VPU broadcast-FMA, no MXU.
    # misc rows 0-2 lanes: [cls-L1(128) | dec-L1(32) | ent-L1(32) | pad(64)].
    wl = misc_ref[0:3, :]                                # (3, 256)
    x2 = jnp.maximum(lat[:, 0:1] * wl[0:1, :] + lat[:, 1:2] * wl[1:2, :]
                     + wl[2:3, :], 0.0)                  # [TB, 256]

    b2f = misc_ref[3:4, :]                               # (1, 256)
    b3f = misc_ref[4:5, 0:128]                           # (1, 128)

    if fuse256:
        # v6e/v7x: two 256-wide block-diagonal pushes for the two fused levels.
        x2b = jnp.maximum(mxu(x2, w2f_ref[...], b2f), 0.0)          # [TB, 256]
        x3 = mxu(x2b, w3f_ref[...], b3f)                            # [TB, 128]
        hc3 = jnp.maximum(x3, 0.0)
    else:
        # v5e (128x128 MXU tiles): consume the same slabs as 128-wide sub-blocks.
        hc = x2[:, 0:128]
        hde = x2[:, 128:256]
        hc2 = jnp.maximum(mxu(hc, w2f_ref[0:128, 0:128], b2f[:, 0:128]), 0.0)
        hde2 = jnp.maximum(mxu(hde, w2f_ref[128:256, 128:256], b2f[:, 128:256]), 0.0)
        hc3 = jnp.maximum(mxu(hc2, w3f_ref[0:128, :], b3f), 0.0)
        x3 = mxu(hde2, w3f_ref[128:256, :], b3f)
    # x3 lanes 64:100 = decoder pre-sigmoid, lane 100 = entropy recon, 101: = 0.
    # hc3 lanes 0:64 = relu(classifier L3) (lanes 64: ignored; cls4 weights zero).

    # classifier L4 (64 -> 4) on the VPU/XLU.
    wc4 = misc_ref[10:14, 0:128]                         # (4, 128)
    cs = [jnp.sum(hc3 * wc4[j:j + 1, :], axis=1, keepdims=True) for j in range(4)]
    cls = jnp.concatenate(cs, axis=1) + misc_ref[14:15, 0:4]   # [TB, 4]

    # decoder sigmoid only on lanes 64:100; entropy lane stays raw.
    lane = jax.lax.broadcasted_iota(jnp.int32, x3.shape, 1)
    xr = jnp.where((lane >= _XREC_OFF) & (lane < _XREC_OFF + N_INPUT - 1),
                   jax.nn.sigmoid(x3), x3)

    # single lane-dense 128-wide output slab (xrec stays at the lanes where the
    # fused L3 matmul produced it -> no 64-lane rotate).
    out_ref[...] = jnp.concatenate(
        [ff[:, 0:N_INPUT], lat, cls,
         jnp.zeros((tb, _XREC_OFF - N_INPUT - LATENT_DIM - 4), f32),
         xr[:, _XREC_OFF:128]], axis=1)


# ---------------------------------------------------------------------------
# Host-side weight packing: 26 arrays -> 4 padded, MXU/VPU-friendly slabs.
# NOTE: assumes W is [in, out] (as produced by init_weights below); a real
# torch state_dict stores nn.Linear weight as [out, in] and would need a .T.
# ---------------------------------------------------------------------------
def pack_params(weights):
    W = [np.asarray(weights[2 * i], np.float32) for i in range(13)]
    b = [np.asarray(weights[2 * i + 1], np.float32).reshape(-1) for i in range(13)]
    # order: 0 enc1, 1 enc2, 2 enc3, 3 dec1, 4 dec2, 5 dec3,
    #        6 ent1, 7 ent2, 8 ent3, 9 cls1, 10 cls2, 11 cls3, 12 cls4

    # encoder L1/L2 (bf16, MXU)
    w_enc = np.zeros((2, 128, 128), np.float32)
    w_enc[0, 0:37, 0:64] = W[0]
    w_enc[1, 0:64, 0:32] = W[1]

    # fused level-2 block-diagonal: [cls2 | dec2 | ent2]
    w2f = np.zeros((256, 256), np.float32)
    w2f[0:128, 0:128] = W[10]            # cls2: 128 -> 128
    w2f[128:160, 128:192] = W[4]         # dec2: 32 -> 64
    w2f[160:192, 192:256] = W[7]         # ent2: 32 -> 64

    # fused level-3 block-diagonal: [cls3 | dec3 | ent3]
    w3f = np.zeros((256, 128), np.float32)
    w3f[0:128, 0:64] = W[11]             # cls3: 128 -> 64
    w3f[128:192, 64:100] = W[5]          # dec3: 64 -> 36
    w3f[192:256, 100:101] = W[8]         # ent3: 64 -> 1

    # f32 misc slab: biases + VPU-path weights.
    misc = np.zeros((16, 256), np.float32)
    # rows 0-2: fused latent layer [cls1(128) | dec1(32) | ent1(32)] + bias row
    misc[0:2, 0:128] = W[9]
    misc[0:2, 128:160] = W[3]
    misc[0:2, 160:192] = W[6]
    misc[2, 0:128] = b[9]
    misc[2, 128:160] = b[3]
    misc[2, 160:192] = b[6]
    # row 3: fused level-2 bias, row 4: fused level-3 bias
    misc[3, 0:128] = b[10]; misc[3, 128:192] = b[4]; misc[3, 192:256] = b[7]
    misc[4, 0:64] = b[11];  misc[4, 64:100] = b[5];  misc[4, 100] = b[8][0]
    # rows 5-6: encoder L1/L2 biases
    misc[5, 0:64] = b[0]
    misc[6, 0:32] = b[1]
    # row 7: enc3 bias; rows 8-9: enc3 weight columns (VPU path)
    misc[7, 0:2] = b[2]
    misc[8:10, 0:32] = W[2].T
    # rows 10-13: cls4 weight columns; row 14: cls4 bias (VPU path)
    misc[10:14, 0:64] = W[12].T
    misc[14, 0:4] = b[12]

    return (jnp.asarray(w_enc, jnp.bfloat16),
            jnp.asarray(w2f, jnp.bfloat16),
            jnp.asarray(w3f, jnp.bfloat16),
            jnp.asarray(misc, jnp.float32))


def _device_caps():
    """Best-effort chip detection (never raises)."""
    try:
        kind = jax.devices()[0].device_kind.lower()
    except Exception:
        kind = ""
    old_gen = any(tag in kind for tag in ("v2", "v3", "v4", "v5"))
    fuse256 = not old_gen          # 256-wide MXU on v6e / v7x (and unknown/newer)
    two_cores = ("v7" in kind) or ("7x" in kind)
    return fuse256, two_cores


# ---------------------------------------------------------------------------
# Wrapper
# ---------------------------------------------------------------------------
def ensemble_forward(probs_flat, weights, block_rows=1024):
    """probs_flat: [B, 20] f32; weights: flat list of 26 arrays (W [in,out], b [1,out])."""
    B = probs_flat.shape[0]
    fuse256, two_cores = _device_caps()
    w_enc, w2f, w3f, misc = pack_params(weights)

    # On 2-TensorCore chips, force >=2 grid steps for mid-size batches so the
    # "parallel" grid axis can be sharded across both cores.
    min_tiles = 2 if (two_cores and B >= 16) else 1
    TB = min(block_rows, _round_up((B + min_tiles - 1) // min_tiles, 8))
    TB = max(TB, 8)
    Bp = _round_up(B, TB)
    if Bp != B:
        probs_flat = jnp.pad(probs_flat, ((0, Bp - B), (0, 0)))
    grid = (Bp // TB,)

    slab = pl.pallas_call(
        partial(ensemble_kernel, fuse256=fuse256),
        out_shape=jax.ShapeDtypeStruct((Bp, _SLAB), jnp.float32),
        grid=grid,
        in_specs=[
            pl.BlockSpec((TB, 20), lambda i: (i, 0)),            # probs tile
            pl.BlockSpec((2, 128, 128), lambda i: (0, 0, 0)),    # enc weights (resident)
            pl.BlockSpec((256, 256), lambda i: (0, 0)),          # fused L2 weights
            pl.BlockSpec((256, 128), lambda i: (0, 0)),          # fused L3 weights
            pl.BlockSpec((16, 256), lambda i: (0, 0)),           # biases + VPU weights
        ],
        out_specs=pl.BlockSpec((TB, _SLAB), lambda i: (i, 0)),
        compiler_params=pltpu.CompilerParams(
            dimension_semantics=("parallel",),
            vmem_limit_bytes=32 * 1024 * 1024,
        ),
    )(probs_flat, w_enc, w2f, w3f, misc)

    latent_x = slab[:B, _LAT_OFF:_LAT_OFF + LATENT_DIM]
    x_recon = slab[:B, _XREC_OFF:_XREC_OFF + N_INPUT]
    pred_classes = slab[:B, _CLS_OFF:_CLS_OFF + 4]
    final_features = slab[:B, _FF_OFF:_FF_OFF + N_INPUT]
    return latent_x, x_recon, pred_classes, final_features


# ---------------------------------------------------------------------------
# Deterministic parameter init (PyTorch nn.Linear default: U(-1/sqrt(fan_in), ...))
# ---------------------------------------------------------------------------
def init_weights(key):
    layer_dims = [
        (37, 64), (64, 32), (32, LATENT_DIM),               # encoder
        (LATENT_DIM, 32), (32, 64), (64, N_INPUT - 1),      # decoder (-> 36)
        (LATENT_DIM, 32), (32, 64), (64, 1),                # entropy_out
        (LATENT_DIM, 128), (128, 128), (128, 64), (64, 4),  # classifier
    ]
    weights = []
    for fan_in, fan_out in layer_dims:
        key, kw, kb = jax.random.split(key, 3)
        bound = 1.0 / math.sqrt(fan_in)
        w = jax.random.uniform(kw, (fan_in, fan_out), jnp.float32, -bound, bound)
        b = jax.random.uniform(kb, (1, fan_out), jnp.float32, -bound, bound)
        weights += [w, b]
    return weights


# ---------------------------------------------------------------------------
# Pure-JAX f32 reference (mirrors the torch forward) for a correctness check
# ---------------------------------------------------------------------------
def reference_forward(probs_flat, weights):
    ps = [probs_flat[:, 4 * i:4 * i + 4] for i in range(5)]
    stacked = jnp.stack(ps, axis=1)                         # [B, 5, 4]
    mean_p = jnp.mean(stacked, axis=1)
    std_p = jnp.std(stacked, axis=1, ddof=1)
    max_p = jnp.max(stacked, axis=1)
    min_p = jnp.min(stacked, axis=1)
    ent = -jnp.sum(mean_p * jnp.log(jnp.maximum(mean_p, 1e-10)), axis=1, keepdims=True)
    ff = jnp.concatenate([probs_flat, mean_p, std_p, max_p, min_p, ent], axis=1)

    def lin(x, i):
        return x @ weights[2 * i] + weights[2 * i + 1]

    h = jax.nn.relu(lin(ff, 0)); h = jax.nn.relu(lin(h, 1)); lat = jax.nn.sigmoid(lin(h, 2))
    d = jax.nn.relu(lin(lat, 3)); d = jax.nn.relu(lin(d, 4)); d = jax.nn.sigmoid(lin(d, 5))
    e = jax.nn.relu(lin(lat, 6)); e = jax.nn.relu(lin(e, 7)); e = lin(e, 8)
    xrec = jnp.concatenate([d, e], axis=1)
    c = jax.nn.relu(lin(lat, 9)); c = jax.nn.relu(lin(c, 10)); c = jax.nn.relu(lin(c, 11))
    cls = lin(c, 12)
    return lat, xrec, cls, ff


if __name__ == "__main__":
    key = jax.random.PRNGKey(0)
    k_params, k_data = jax.random.split(key)

    weights = init_weights(k_params)

    # Synthetic base-model softmax probabilities stand in for the sklearn/dnn
    # predict_proba outputs (see TODO at top of file).
    B = 8
    logits = jax.random.normal(k_data, (B, 5, 4), jnp.float32)
    probs = jax.nn.softmax(logits, axis=-1)
    probs_flat = probs.reshape(B, 20)   # torch.cat([logit, svm, knn, dct, dnn], dim=1)

    outs = jax.block_until_ready(ensemble_forward(probs_flat, weights))
    ref = reference_forward(probs_flat, weights)
    names = ["latent_x", "x_recon", "pred_classes", "final_features"]
    # Tolerance loosened vs the all-f32 version: MXU matmuls now use bf16 operands.
    for name, o, r in zip(names, outs, ref):
        np.testing.assert_allclose(np.asarray(o), np.asarray(r),
                                   rtol=3e-2, atol=3e-2, err_msg=name)

    print("KERNEL_OK")
</pallas_src>

<mosaic_0001>
module attributes {stable_mosaic.version = 11 : i64} {
  func.func @ensemble_kernel(%arg0: i32, %arg1: memref<8x20xf32, #tpu.memory_space<vmem>>, %arg2: memref<2x128x128xbf16, #tpu.memory_space<vmem>>, %arg3: memref<256x256xbf16, #tpu.memory_space<vmem>>, %arg4: memref<256x128xbf16, #tpu.memory_space<vmem>>, %arg5: memref<16x256xf32, #tpu.memory_space<vmem>>, %arg6: memref<8x128xf32, #tpu.memory_space<vmem>>) attributes {dimension_semantics = [#tpu.dimension_semantics<parallel>], iteration_bounds = array<i64: 1>, scalar_prefetch = 0 : i64, scratch_operands = 0 : i64, tpu.core_type = #tpu.core_type<tc>, window_params = [{transform_indices = @transform_0, window_bounds = array<i64: 8, 20>}, {pipeline_mode = #tpu.pipeline_mode<synchronous>, transform_indices = @transform_1, window_bounds = array<i64: 2, 128, 128>}, {pipeline_mode = #tpu.pipeline_mode<synchronous>, transform_indices = @transform_2, window_bounds = array<i64: 256, 256>}, {pipeline_mode = #tpu.pipeline_mode<synchronous>, transform_indices = @transform_3, window_bounds = array<i64: 256, 128>}, {pipeline_mode = #tpu.pipeline_mode<synchronous>, transform_indices = @transform_4, window_bounds = array<i64: 16, 256>}, {transform_indices = @transform_5, window_bounds = array<i64: 8, 128>}]} {
    %c0 = arith.constant 0 : index
    %c0_0 = arith.constant 0 : index
    %0 = vector.load %arg1[%c0, %c0_0] : memref<8x20xf32, #tpu.memory_space<vmem>>, vector<8x20xf32>
    %1 = vector.extract_strided_slice %0 {offsets = [0, 0], sizes = [8, 4], strides = [1, 1]} : vector<8x20xf32> to vector<8x4xf32>
    %2 = vector.extract_strided_slice %0 {offsets = [0, 4], sizes = [8, 4], strides = [1, 1]} : vector<8x20xf32> to vector<8x4xf32>
    %3 = vector.extract_strided_slice %0 {offsets = [0, 8], sizes = [8, 4], strides = [1, 1]} : vector<8x20xf32> to vector<8x4xf32>
    %4 = vector.extract_strided_slice %0 {offsets = [0, 12], sizes = [8, 4], strides = [1, 1]} : vector<8x20xf32> to vector<8x4xf32>
    %5 = vector.extract_strided_slice %0 {offsets = [0, 16], sizes = [8, 4], strides = [1, 1]} : vector<8x20xf32> to vector<8x4xf32>
    %6 = arith.addf %1, %2 : vector<8x4xf32>
    %7 = arith.addf %6, %3 : vector<8x4xf32>
    %8 = arith.addf %7, %4 : vector<8x4xf32>
    %9 = arith.addf %8, %5 : vector<8x4xf32>
    %cst = arith.constant 2.000000e-01 : f32
    %10 = vector.broadcast %cst : f32 to vector<8x4xf32>
    %11 = arith.mulf %9, %10 : vector<8x4xf32>
    %12 = arith.subf %1, %11 : vector<8x4xf32>
    %13 = arith.subf %2, %11 : vector<8x4xf32>
    %14 = arith.subf %3, %11 : vector<8x4xf32>
    %15 = arith.subf %4, %11 : vector<8x4xf32>
    %16 = arith.subf %5, %11 : vector<8x4xf32>
    %17 = arith.mulf %12, %12 : vector<8x4xf32>
    %18 = arith.mulf %13, %13 : vector<8x4xf32>
    %19 = arith.addf %17, %18 : vector<8x4xf32>
    %20 = arith.mulf %14, %14 : vector<8x4xf32>
    %21 = arith.addf %19, %20 : vector<8x4xf32>
    %22 = arith.mulf %15, %15 : vector<8x4xf32>
    %23 = arith.addf %21, %22 : vector<8x4xf32>
    %24 = arith.mulf %16, %16 : vector<8x4xf32>
    %25 = arith.addf %23, %24 : vector<8x4xf32>
    %cst_1 = arith.constant 2.500000e-01 : f32
    %26 = vector.broadcast %cst_1 : f32 to vector<8x4xf32>
    %27 = arith.mulf %25, %26 : vector<8x4xf32>
    %28 = math.sqrt %27 : vector<8x4xf32>
    %29 = arith.maximumf %1, %2 : vector<8x4xf32>
    %30 = arith.maximumf %3, %4 : vector<8x4xf32>
    %31 = arith.maximumf %29, %30 : vector<8x4xf32>
    %32 = arith.maximumf %31, %5 : vector<8x4xf32>
    %33 = arith.minimumf %1, %2 : vector<8x4xf32>
    %34 = arith.minimumf %3, %4 : vector<8x4xf32>
    %35 = arith.minimumf %33, %34 : vector<8x4xf32>
    %36 = arith.minimumf %35, %5 : vector<8x4xf32>
    %cst_2 = arith.constant 1.000000e-10 : f32
    %37 = vector.broadcast %cst_2 : f32 to vector<8x4xf32>
    %38 = arith.maximumf %11, %37 : vector<8x4xf32>
    %39 = math.log %38 : vector<8x4xf32>
    %40 = arith.mulf %11, %39 : vector<8x4xf32>
    %cst_3 = arith.constant dense<0.000000e+00> : vector<8xf32>
    %41 = vector.multi_reduction <add>, %40, %cst_3 [1] : vector<8x4xf32> to vector<8xf32>
    %42 = vector.shape_cast %41 : vector<8xf32> to vector<8x1xf32>
    %cst_4 = arith.constant 0.000000e+00 : f32
    %43 = vector.broadcast %cst_4 : f32 to vector<8x1xf32>
    %44 = arith.subf %43, %42 : vector<8x1xf32>
    %cst_5 = arith.constant 0.000000e+00 : f32
    %45 = vector.broadcast %cst_5 : f32 to vector<8x91xf32>
    %46 = tpu.concatenate %0, %11, %28, %32, %36, %44, %45 in 1 : vector<8x20xf32>, vector<8x4xf32>, vector<8x4xf32>, vector<8x4xf32>, vector<8x4xf32>, vector<8x1xf32>, vector<8x91xf32> -> vector<8x128xf32>
    %c0_6 = arith.constant 0 : index
    %c0_7 = arith.constant 0 : index
    %c0_8 = arith.constant 0 : index
    %47 = vector.load %arg2[%c0_6, %c0_7, %c0_8] : memref<2x128x128xbf16, #tpu.memory_space<vmem>>, vector<1x128x128xbf16>
    %48 = vector.shape_cast %47 : vector<1x128x128xbf16> to vector<128x128xbf16>
    %c5 = arith.constant 5 : index
    %c0_9 = arith.constant 0 : index
    %49 = vector.load %arg5[%c5, %c0_9] : memref<16x256xf32, #tpu.memory_space<vmem>>, vector<1x128xf32>
    %50 = arith.truncf %46 : vector<8x128xf32> to vector<8x128xbf16>
    %cst_10 = arith.constant dense<0.000000e+00> : vector<8x128xf32>
    %51 = tpu.matmul %50, %48, %cst_10 {dimension_numbers = #tpu.dot_dimension_numbers<[1], [0], [0], [1], [0, 0, 1, 1], [], []>} : vector<8x128xbf16>, vector<128x128xbf16>, vector<8x128xf32> -> vector<8x128xf32>
    %52 = vector.broadcast %49 : vector<1x128xf32> to vector<8x128xf32>
    %53 = arith.addf %51, %52 : vector<8x128xf32>
    %cst_11 = arith.constant 0.000000e+00 : f32
    %54 = vector.broadcast %cst_11 : f32 to vector<8x128xf32>
    %55 = arith.maximumf %53, %54 : vector<8x128xf32>
    %c1 = arith.constant 1 : index
    %c0_12 = arith.constant 0 : index
    %c0_13 = arith.constant 0 : index
    %56 = vector.load %arg2[%c1, %c0_12, %c0_13] : memref<2x128x128xbf16, #tpu.memory_space<vmem>>, vector<1x128x128xbf16>
    %57 = vector.shape_cast %56 : vector<1x128x128xbf16> to vector<128x128xbf16>
    %c6 = arith.constant 6 : index
    %c0_14 = arith.constant 0 : index
    %58 = vector.load %arg5[%c6, %c0_14] : memref<16x256xf32, #tpu.memory_space<vmem>>, vector<1x128xf32>
    %59 = arith.truncf %55 : vector<8x128xf32> to vector<8x128xbf16>
    %cst_15 = arith.constant dense<0.000000e+00> : vector<8x128xf32>
    %60 = tpu.matmul %59, %57, %cst_15 {dimension_numbers = #tpu.dot_dimension_numbers<[1], [0], [0], [1], [0, 0, 1, 1], [], []>} : vector<8x128xbf16>, vector<128x128xbf16>, vector<8x128xf32> -> vector<8x128xf32>
    %61 = vector.broadcast %58 : vector<1x128xf32> to vector<8x128xf32>
    %62 = arith.addf %60, %61 : vector<8x128xf32>
    %cst_16 = arith.constant 0.000000e+00 : f32
    %63 = vector.broadcast %cst_16 : f32 to vector<8x128xf32>
    %64 = arith.maximumf %62, %63 : vector<8x128xf32>
    %c8 = arith.constant 8 : index
    %c0_17 = arith.constant 0 : index
    %65 = vector.load %arg5[%c8, %c0_17] : memref<16x256xf32, #tpu.memory_space<vmem>>, vector<2x128xf32>
    %66 = vector.extract_strided_slice %65 {offsets = [0, 0], sizes = [1, 128], strides = [1, 1]} : vector<2x128xf32> to vector<1x128xf32>
    %67 = vector.broadcast %66 : vector<1x128xf32> to vector<8x128xf32>
    %68 = arith.mulf %64, %67 : vector<8x128xf32>
    %cst_18 = arith.constant dense<0.000000e+00> : vector<8xf32>
    %69 = vector.multi_reduction <add>, %68, %cst_18 [1] : vector<8x128xf32> to vector<8xf32>
    %70 = vector.shape_cast %69 : vector<8xf32> to vector<8x1xf32>
    %71 = vector.extract_strided_slice %65 {offsets = [1, 0], sizes = [1, 128], strides = [1, 1]} : vector<2x128xf32> to vector<1x128xf32>
    %72 = vector.broadcast %71 : vector<1x128xf32> to vector<8x128xf32>
    %73 = arith.mulf %64, %72 : vector<8x128xf32>
    %cst_19 = arith.constant dense<0.000000e+00> : vector<8xf32>
    %74 = vector.multi_reduction <add>, %73, %cst_19 [1] : vector<8x128xf32> to vector<8xf32>
    %75 = vector.shape_cast %74 : vector<8xf32> to vector<8x1xf32>
    %76 = tpu.concatenate %70, %75 in 1 : vector<8x1xf32>, vector<8x1xf32> -> vector<8x2xf32>
    %c7 = arith.constant 7 : index
    %c0_20 = arith.constant 0 : index
    %77 = vector.load %arg5[%c7, %c0_20] : memref<16x256xf32, #tpu.memory_space<vmem>>, vector<1x2xf32>
    %78 = vector.broadcast %77 : vector<1x2xf32> to vector<8x2xf32>
    %79 = arith.addf %76, %78 : vector<8x2xf32>
    %80 = arith.negf %79 : vector<8x2xf32>
    %81 = math.exp %80 : vector<8x2xf32>
    %cst_21 = arith.constant 1.000000e+00 : f32
    %82 = vector.broadcast %cst_21 : f32 to vector<8x2xf32>
    %83 = arith.addf %82, %81 : vector<8x2xf32>
    %84 = arith.divf %82, %83 : vector<8x2xf32>
    %c0_22 = arith.constant 0 : index
    %c0_23 = arith.constant 0 : index
    %85 = vector.load %arg5[%c0_22, %c0_23] : memref<16x256xf32, #tpu.memory_space<vmem>>, vector<3x256xf32>
    %86 = vector.extract_strided_slice %84 {offsets = [0, 0], sizes = [8, 1], strides = [1, 1]} : vector<8x2xf32> to vector<8x1xf32>
    %87 = vector.extract_strided_slice %85 {offsets = [0, 0], sizes = [1, 256], strides = [1, 1]} : vector<3x256xf32> to vector<1x256xf32>
    %88 = vector.broadcast %86 : vector<8x1xf32> to vector<8x256xf32>
    %89 = vector.broadcast %87 : vector<1x256xf32> to vector<8x256xf32>
    %90 = arith.mulf %88, %89 : vector<8x256xf32>
    %91 = vector.extract_strided_slice %84 {offsets = [0, 1], sizes = [8, 1], strides = [1, 1]} : vector<8x2xf32> to vector<8x1xf32>
    %92 = vector.extract_strided_slice %85 {offsets = [1, 0], sizes = [1, 256], strides = [1, 1]} : vector<3x256xf32> to vector<1x256xf32>
    %93 = vector.broadcast %91 : vector<8x1xf32> to vector<8x256xf32>
    %94 = vector.broadcast %92 : vector<1x256xf32> to vector<8x256xf32>
    %95 = arith.mulf %93, %94 : vector<8x256xf32>
    %96 = arith.addf %90, %95 : vector<8x256xf32>
    %97 = vector.extract_strided_slice %85 {offsets = [2, 0], sizes = [1, 256], strides = [1, 1]} : vector<3x256xf32> to vector<1x256xf32>
    %98 = vector.broadcast %97 : vector<1x256xf32> to vector<8x256xf32>
    %99 = arith.addf %96, %98 : vector<8x256xf32>
    %cst_24 = arith.constant 0.000000e+00 : f32
    %100 = vector.broadcast %cst_24 : f32 to vector<8x256xf32>
    %101 = arith.maximumf %99, %100 : vector<8x256xf32>
    %c3 = arith.constant 3 : index
    %c0_25 = arith.constant 0 : index
    %102 = vector.load %arg5[%c3, %c0_25] : memref<16x256xf32, #tpu.memory_space<vmem>>, vector<1x256xf32>
    %c4 = arith.constant 4 : index
    %c0_26 = arith.constant 0 : index
    %103 = vector.load %arg5[%c4, %c0_26] : memref<16x256xf32, #tpu.memory_space<vmem>>, vector<1x128xf32>
    %c0_27 = arith.constant 0 : index
    %c0_28 = arith.constant 0 : index
    %104 = vector.load %arg3[%c0_27, %c0_28] : memref<256x256xbf16, #tpu.memory_space<vmem>>, vector<256x256xbf16>
    %105 = arith.truncf %101 : vector<8x256xf32> to vector<8x256xbf16>
    %cst_29 = arith.constant dense<0.000000e+00> : vector<8x256xf32>
    %106 = tpu.matmul %105, %104, %cst_29 {dimension_numbers = #tpu.dot_dimension_numbers<[1], [0], [0], [1], [0, 0, 1, 1], [], []>} : vector<8x256xbf16>, vector<256x256xbf16>, vector<8x256xf32> -> vector<8x256xf32>
    %107 = vector.broadcast %102 : vector<1x256xf32> to vector<8x256xf32>
    %108 = arith.addf %106, %107 : vector<8x256xf32>
    %cst_30 = arith.constant 0.000000e+00 : f32
    %109 = vector.broadcast %cst_30 : f32 to vector<8x256xf32>
    %110 = arith.maximumf %108, %109 : vector<8x256xf32>
    %c0_31 = arith.constant 0 : index
    %c0_32 = arith.constant 0 : index
    %111 = vector.load %arg4[%c0_31, %c0_32] : memref<256x128xbf16, #tpu.memory_space<vmem>>, vector<256x128xbf16>
    %112 = arith.truncf %110 : vector<8x256xf32> to vector<8x256xbf16>
    %cst_33 = arith.constant dense<0.000000e+00> : vector<8x128xf32>
    %113 = tpu.matmul %112, %111, %cst_33 {dimension_numbers = #tpu.dot_dimension_numbers<[1], [0], [0], [1], [0, 0, 1, 1], [], []>} : vector<8x256xbf16>, vector<256x128xbf16>, vector<8x128xf32> -> vector<8x128xf32>
    %114 = vector.broadcast %103 : vector<1x128xf32> to vector<8x128xf32>
    %115 = arith.addf %113, %114 : vector<8x128xf32>
    %cst_34 = arith.constant 0.000000e+00 : f32
    %116 = vector.broadcast %cst_34 : f32 to vector<8x128xf32>
    %117 = arith.maximumf %115, %116 : vector<8x128xf32>
    %c10 = arith.constant 10 : index
    %c0_35 = arith.constant 0 : index
    %118 = vector.load %arg5[%c10, %c0_35] : memref<16x256xf32, #tpu.memory_space<vmem>>, vector<4x128xf32>
    %119 = vector.extract_strided_slice %118 {offsets = [0, 0], sizes = [1, 128], strides = [1, 1]} : vector<4x128xf32> to vector<1x128xf32>
    %120 = vector.broadcast %119 : vector<1x128xf32> to vector<8x128xf32>
    %121 = arith.mulf %117, %120 : vector<8x128xf32>
    %cst_36 = arith.constant dense<0.000000e+00> : vector<8xf32>
    %122 = vector.multi_reduction <add>, %121, %cst_36 [1] : vector<8x128xf32> to vector<8xf32>
    %123 = vector.shape_cast %122 : vector<8xf32> to vector<8x1xf32>
    %124 = vector.extract_strided_slice %118 {offsets = [1, 0], sizes = [1, 128], strides = [1, 1]} : vector<4x128xf32> to vector<1x128xf32>
    %125 = vector.broadcast %124 : vector<1x128xf32> to vector<8x128xf32>
    %126 = arith.mulf %117, %125 : vector<8x128xf32>
    %cst_37 = arith.constant dense<0.000000e+00> : vector<8xf32>
    %127 = vector.multi_reduction <add>, %126, %cst_37 [1] : vector<8x128xf32> to vector<8xf32>
    %128 = vector.shape_cast %127 : vector<8xf32> to vector<8x1xf32>
    %129 = vector.extract_strided_slice %118 {offsets = [2, 0], sizes = [1, 128], strides = [1, 1]} : vector<4x128xf32> to vector<1x128xf32>
    %130 = vector.broadcast %129 : vector<1x128xf32> to vector<8x128xf32>
    %131 = arith.mulf %117, %130 : vector<8x128xf32>
    %cst_38 = arith.constant dense<0.000000e+00> : vector<8xf32>
    %132 = vector.multi_reduction <add>, %131, %cst_38 [1] : vector<8x128xf32> to vector<8xf32>
    %133 = vector.shape_cast %132 : vector<8xf32> to vector<8x1xf32>
    %134 = vector.extract_strided_slice %118 {offsets = [3, 0], sizes = [1, 128], strides = [1, 1]} : vector<4x128xf32> to vector<1x128xf32>
    %135 = vector.broadcast %134 : vector<1x128xf32> to vector<8x128xf32>
    %136 = arith.mulf %117, %135 : vector<8x128xf32>
    %cst_39 = arith.constant dense<0.000000e+00> : vector<8xf32>
    %137 = vector.multi_reduction <add>, %136, %cst_39 [1] : vector<8x128xf32> to vector<8xf32>
    %138 = vector.shape_cast %137 : vector<8xf32> to vector<8x1xf32>
    %139 = tpu.concatenate %123, %128, %133, %138 in 1 : vector<8x1xf32>, vector<8x1xf32>, vector<8x1xf32>, vector<8x1xf32> -> vector<8x4xf32>
    %c14 = arith.constant 14 : index
    %c0_40 = arith.constant 0 : index
    %140 = vector.load %arg5[%c14, %c0_40] : memref<16x256xf32, #tpu.memory_space<vmem>>, vector<1x4xf32>
    %141 = vector.broadcast %140 : vector<1x4xf32> to vector<8x4xf32>
    %142 = arith.addf %139, %141 : vector<8x4xf32>
    %143 = tpu.iota {dimensions = array<i32: 1>} : vector<8x128xi32>
    %c64_i32 = arith.constant 64 : i32
    %144 = vector.broadcast %c64_i32 : i32 to vector<8x128xi32>
    %145 = arith.cmpi sge, %143, %144 : vector<8x128xi32>
    %c100_i32 = arith.constant 100 : i32
    %146 = vector.broadcast %c100_i32 : i32 to vector<8x128xi32>
    %147 = arith.cmpi slt, %143, %146 : vector<8x128xi32>
    %148 = arith.andi %145, %147 : vector<8x128xi1>
    %149 = arith.negf %115 : vector<8x128xf32>
    %150 = math.exp %149 : vector<8x128xf32>
    %cst_41 = arith.constant 1.000000e+00 : f32
    %151 = vector.broadcast %cst_41 : f32 to vector<8x128xf32>
    %152 = arith.addf %151, %150 : vector<8x128xf32>
    %153 = arith.divf %151, %152 : vector<8x128xf32>
    %154 = arith.select %148, %153, %115 : vector<8x128xi1>, vector<8x128xf32>
    %155 = vector.extract_strided_slice %46 {offsets = [0, 0], sizes = [8, 37], strides = [1, 1]} : vector<8x128xf32> to vector<8x37xf32>
    %cst_42 = arith.constant 0.000000e+00 : f32
    %156 = vector.broadcast %cst_42 : f32 to vector<8x21xf32>
    %157 = vector.extract_strided_slice %154 {offsets = [0, 64], sizes = [8, 64], strides = [1, 1]} : vector<8x128xf32> to vector<8x64xf32>
    %158 = tpu.concatenate %155, %84, %142, %156, %157 in 1 : vector<8x37xf32>, vector<8x2xf32>, vector<8x4xf32>, vector<8x21xf32>, vector<8x64xf32> -> vector<8x128xf32>
    %c0_43 = arith.constant 0 : index
    %c0_44 = arith.constant 0 : index
    %159 = vector.load %arg6[%c0_43, %c0_44] : memref<8x128xf32, #tpu.memory_space<vmem>>, vector<8x128xf32>
    tpu.vector_store %arg6[%c0_43, %c0_44], %158 {strides = array<i32>} : memref<8x128xf32, #tpu.memory_space<vmem>>, vector<8x128xf32>,
    return
  }
  func.func @transform_0(%arg0: i32) -> (i32, i32) {
    %c0_i32 = arith.constant 0 : i32
    %c0_i32_0 = arith.constant 0 : i32
    return %arg0, %c0_i32 : i32, i32
  }
  func.func @transform_1(%arg0: i32) -> (i32, i32, i32) {
    %c0_i32 = arith.constant 0 : i32
    %c0_i32_0 = arith.constant 0 : i32
    %c0_i32_1 = arith.constant 0 : i32
    %c0_i32_2 = arith.constant 0 : i32
    return %c0_i32, %c0_i32_0, %c0_i32_1 : i32, i32, i32
  }
  func.func @transform_2(%arg0: i32) -> (i32, i32) {
    %c0_i32 = arith.constant 0 : i32
    %c0_i32_0 = arith.constant 0 : i32
    %c0_i32_1 = arith.constant 0 : i32
    return %c0_i32, %c0_i32_0 : i32, i32
  }
  func.func @transform_3(%arg0: i32) -> (i32, i32) {
    %c0_i32 = arith.constant 0 : i32
    %c0_i32_0 = arith.constant 0 : i32
    %c0_i32_1 = arith.constant 0 : i32
    return %c0_i32, %c0_i32_0 : i32, i32
  }
  func.func @transform_4(%arg0: i32) -> (i32, i32) {
    %c0_i32 = arith.constant 0 : i32
    %c0_i32_0 = arith.constant 0 : i32
    %c0_i32_1 = arith.constant 0 : i32
    return %c0_i32, %c0_i32_0 : i32, i32
  }
  func.func @transform_5(%arg0: i32) -> (i32, i32) {
    %c0_i32 = arith.constant 0 : i32
    %c0_i32_0 = arith.constant 0 : i32
    return %arg0, %c0_i32 : i32, i32
  }
}

</mosaic_0001>

<bundles_post_ra>
// kernel: tpu_custom_call.1
= control target key start
LH: loop header
LB: loop body
LE: loop exit
PB: predicated region body
PF: predicated region fallthrough
CT: control target
= control target key end

     0   :  { %10 = vsyncpa [#allocation3], 0  ;;  %s1564_s0 = inlined_call_operand.hbm [shape: f32[8,20], index: 0, kind: input, shape index: {}]   ;;  %s1565_s1 = inlined_call_operand.hbm [shape: bf16[2,128,128], index: 1, kind: input, shape index: {}]   ;;  %s1566_s2 = inlined_call_operand.hbm [shape: bf16[256,256], index: 2, kind: input, shape index: {}]   ;;  %s1567_s3 = inlined_call_operand.hbm [shape: bf16[256,128], index: 3, kind: input, shape index: {}]   ;;  %s1568_s4 = inlined_call_operand.hbm [shape: f32[16,256], index: 4, kind: input, shape index: {}]   ;;  %s1569_s5 = inlined_call_operand.hbm [shape: f32[8,128], index: 5, kind: output, shape index: {}]  }
   0x1   :  { %11 = vsyncpa [#allocation6], 0 }
   0x2   :  { %12 = vsyncpa [#allocation9], 0 }
   0x3   :  { %13 = vsyncpa [#allocation4], 0  ;;  %s1394_s18 = smov [#allocation5]  }
   0x4   :  { %s29_s19 = sshll.u32 %s1394_s18, 4  ;;  %s30_s19 = int_to_ptr.vmem [resolvable:$true] %s29_s19 }
   0x5   :  { %s1274_s20 = scalar_lea.vmem %s30_s19, 2048  ;;  %p1279_p1 = scmp.lt.s32.totalorder %s30_s19, %s30_s19 }
   0x6   :  { %p1275_p0 = scmp.ne.s32.totalorder %s30_s19, %s1274_s20  ;;  %p1280_p2 = scmp.lt.s32.totalorder %s1274_s20, %s1274_s20 }
   0x8   :  { %p1281_p3 = por %p1280_p2, %p1279_p1 }
   0xa   :  { %p1282_p4 = pnand %p1281_p3, %p1275_p0 }
   0xc   :  { %1285 = shalt.err (!%p1282_p4)
}
   0xd   :  { %s1395_s21 = smov 64   ;;  %s1396_s22 = smov 4  }
   0xe   :  { %35 = dma.hbm_to_vmem [thread:$0]  %s1565_s1, 2048, %s30_s19, [#allocation6], %s1395_s21, %s1395_s21, %s1396_s22  }
   0xf   :  { %s1397_s25 = smov [#allocation8]   ;;  %s1398_s27 = smov [#allocation2]  }
  0x10   :  { %s53_s26 = sshll.u32 %s1397_s25, 4  ;;  %s20_s28 = sshll.u32 %s1398_s27, 4  ;;  %s54_s26 = int_to_ptr.vmem [resolvable:$true] %s53_s26  ;;  %s21_s28 = int_to_ptr.vmem [resolvable:$true] %s20_s28 }
  0x11   :  { %s1294_s29 = scalar_lea.vmem %s54_s26, 2048  ;;  %p1299_p6 = scmp.lt.s32.totalorder %s54_s26, %s54_s26 }
  0x12   :  { %p1295_p5 = scmp.ne.s32.totalorder %s54_s26, %s1294_s29  ;;  %p1300_p7 = scmp.lt.s32.totalorder %s1294_s29, %s1294_s29 }
  0x14   :  { %p1301_p8 = por %p1300_p7, %p1299_p6 }
  0x16   :  { %p1302_p9 = pnand %p1301_p8, %p1295_p5 }
  0x18   :  { %1305 = shalt.err (!%p1302_p9)
}
  0x19   :  { %59 = dma.hbm_to_vmem [thread:$0]  %s1567_s3, 2048, %s54_s26, [#allocation9], %s1395_s21, %s1395_s21, %s1396_s22  }
  0x1a   :  { %s1314_s7 = scalar_lea.vmem %s21_s28, 128  ;;  %p1319_p11 = scmp.lt.s32.totalorder %s21_s28, %s21_s28 }
  0x1b   :  { %p1315_p10 = scmp.ne.s32.totalorder %s21_s28, %s1314_s7  ;;  %p1320_p12 = scmp.lt.s32.totalorder %s1314_s7, %s1314_s7 }
  0x1d   :  { %p1321_p13 = por %p1320_p12, %p1319_p11 }
  0x1f   :  { %p1322_p0 = pnand %p1321_p13, %p1315_p10 }
  0x21   :  { %1325 = shalt.err (!%p1322_p0)
}
  0x22   :  { %23 = dma.hbm_to_vmem [thread:$0]  %s1564_s0, 128, %s21_s28, [#allocation3]  }
  0x23   :  { %s1399_s9 = smov [#allocation7]  }
  0x24   :  { %s41_s10 = sshll.u32 %s1399_s9, 4  ;;  %s42_s10 = int_to_ptr.vmem [resolvable:$true] %s41_s10 }
  0x25   :  { %s1334_s11 = scalar_lea.vmem %s42_s10, 4096  ;;  %p1339_p2 = scmp.lt.s32.totalorder %s42_s10, %s42_s10 }
  0x26   :  { %p1335_p1 = scmp.ne.s32.totalorder %s42_s10, %s1334_s11  ;;  %p1340_p3 = scmp.lt.s32.totalorder %s1334_s11, %s1334_s11 }
  0x28   :  { %p1341_p4 = por %p1340_p3, %p1339_p2 }
  0x2a   :  { %p1342_p5 = pnand %p1341_p4, %p1335_p1 }
  0x2c   :  { %1345 = shalt.err (!%p1342_p5)
}
  0x2d   :  { %s1400_s3 = smov 128   ;;  %s1401_s12 = smov 8  }
  0x2e   :  { %47 = dma.hbm_to_vmem [thread:$0]  %s1566_s2, 4096, %s42_s10, [#allocation6], %s1400_s3, %s1400_s3, %s1401_s12  }
  0x2f   :  { %s1402_s15 = smov [#allocation10]  }
  0x30   :  { %s65_s16 = sshll.u32 %s1402_s15, 4  ;;  %s66_s16 = int_to_ptr.vmem [resolvable:$true] %s65_s16 }
  0x31   :  { %s1354_s0 = scalar_lea.vmem %s66_s16, 512  ;;  %p1359_p7 = scmp.lt.s32.totalorder %s66_s16, %s66_s16 }
  0x32   :  { %p1355_p6 = scmp.ne.s32.totalorder %s66_s16, %s1354_s0  ;;  %p1360_p8 = scmp.lt.s32.totalorder %s1354_s0, %s1354_s0 }
  0x34   :  { %p1361_p9 = por %p1360_p8, %p1359_p7 }
  0x36   :  { %p1362_p10 = pnand %p1361_p9, %p1355_p6 }
  0x38   :  { %1365 = shalt.err (!%p1362_p10)
}
  0x39   :  { %s1403_s17 = smov 256   ;;  %s1404_s18 = smov 16  }
  0x3a   :  { %71 = dma.hbm_to_vmem [thread:$0]  %s1568_s4, 512, %s66_s16, [#allocation9], %s1403_s17, %s1403_s17, %s1404_s18  }
  0x3b   :  { %1386 = dma.done.wait [#allocation3], 128  }
  0x3c   :  { %1387 = vsyncadd [#allocation3], 4294967168 }
  0x3d   :  { %1388 = dma.done.wait [#allocation6], 6144  }
  0x3e   :  { %1389 = vsyncadd [#allocation6], 4294961152 }
  0x3f   :  { %1390 = dma.done.wait [#allocation9], 2560  }
  0x40   :  { %1391 = vsyncadd [#allocation9], 4294964736  ;;  %v1469_v0 = vld [vmem:[#allocation2] sm:$0xff]  ;;  %s1405_s2 = smov 124   ;;  %s1406_s21 = smov 116   ;;  %vm176_vm0 = vcmask 31744  }
  0x41   :  { %90 = vrot.lane.b32.xlu0 %v1469_v0, %s1405_s2  ;;  %98 = vrot.lane.b32.xlu1 %v1469_v0, %s1406_s21  ;;  %s1407_s23 = smov 120   ;;  %s1408_s4 = smov 112   ;;  %v1174_v29 = vld [vmem:[#allocation5 + $0x38] sm:$0xff]   ;;  %v1411_v30 = vmov 0.0   ;;  %v1175_v31 = vld [vmem:[#allocation5 + $0x30] sm:$0xff]   ;;  %v1176_v34 = vld [vmem:[#allocation5 + $0x28] sm:$0xff]  }
  0x42   :  { %s1409_s24 = smov 12   ;;  %1104 = vmatprep.subr.bf16.mxu0 %v1411_v30  ;;  %1124 = vmatprep.subr.bf16.mxu1 %v1411_v30  ;;  %v1177_v38 = vld [vmem:[#allocation5 + $0x20] sm:$0xff]   ;;  %v1178_v42 = vld [vmem:[#allocation5 + $0x18] sm:$0xff]   ;;  %v1179_v48 = vld [vmem:[#allocation5 + $0x10] sm:$0xff]   ;;  %s1412_s25 = smov 28   ;;  %vm1413_vm1 = vmmov 0  }
  0x43   :  { %1105 = vmatpush3.bf16.msra.mxu0 %v1174_v29  ;;  %v1180_v50 = vld [vmem:[#allocation5 + $0x8] sm:$0xff]   ;;  %v1181_v51 = vld [vmem:[#allocation5] sm:$0xff]   ;;  %1120 = vmatprep.mubr.msk.bf16.mxu0 %vm1413_vm1, %v1411_v30  ;;  %v1182_v54 = vld [vmem:[#allocation5 + $0x78] sm:$0xff]   ;;  %s1414_s26 = smov 24   ;;  %s1415_s27 = smov 32   ;;  %vm196_vm4 = vcmask 162816  }
  0x44   :  { %1106 = vmatprep.subr.bf16.mxu0 %v1411_v30  ;;  %1140 = vmatprep.mubr.msk.bf16.mxu1 %vm1413_vm1, %v1411_v30  ;;  %v1183_v57 = vld [vmem:[#allocation5 + $0x70] sm:$0xff]   ;;  %v1184_v61 = vld [vmem:[#allocation5 + $0x68] sm:$0xff]   ;;  %v1185_v63 = vld [vmem:[#allocation5 + $0x60] sm:$0xff]   ;;  %vm198_vm5 = vcmask 195584   ;;  %vm200_vm6 = vcmask 228352   ;;  %vm202_vm7 = vcmask 261120  }
  0x45   :  { %94 = vrot.lane.b32.xlu0 %v1469_v0, %s1407_s23  ;;  %102 = vrot.lane.b32.xlu1 %v1469_v0, %s1408_s4  ;;  %vm204_vm8 = vcmask 293888   ;;  %vm206_vm9 = vcmask 302080   ;;  %v423_v29 = vld [vmem:[#allocation10 + $0x10] sm:$0x3]  ;;  %vm438_vm11 = vcmask 7168   ;;  %s1418_s28 = smov 37  }
  0x46   :  { %1125 = vmatpush3.bf16.msra.mxu1 %v1182_v54  ;;  %vm1003_vm10 = vmpackc.low %vm206_vm9, %vm206_vm9  ;;  %v1210_v54 = vld [vmem:[#allocation7 + $0x14] ss:$8 sps:$4 sm:$0xff]   ;;  %vm945_vm12 = vcmask 15360   ;;  %vm947_vm13 = vcmask 23552   ;;  %s1419_s29 = smov 39   ;;  %vm973_vm1 = vcmask 351232  }
  0x47   :  { %1107 = vmatpush3.bf16.msra.mxu0 %v1175_v31  ;;  %1126 = vmatprep.subr.bf16.mxu1 %v1411_v30  ;;  %s1420_s30 = smov [#allocation11]  }
  0x48   :  { %1108 = vmatprep.subr.bf16.mxu0 %v1411_v30  ;;  %s984_s6 = sshll.u32 %s1420_s30, 4  ;;  %s985_s6 = int_to_ptr.vmem [resolvable:$true] %s984_s6 }
  0x49   :  { %s1366_s7 = scalar_lea.vmem %s985_s6, 128  ;;  %p1371_p12 = scmp.lt.s32.totalorder %s985_s6, %s985_s6 }
  0x4a   :  { %1127 = vmatpush3.bf16.msra.mxu1 %v1183_v57  ;;  %v1211_v57 = vld [vmem:[#allocation7] ss:$8 sps:$4 sm:$0xff]   ;;  %p1367_p11 = scmp.ne.s32.totalorder %s985_s6, %s1366_s7  ;;  %p1372_p13 = scmp.lt.s32.totalorder %s1366_s7, %s1366_s7 }
  0x4b   :  { %1109 = vmatpush3.bf16.msra.mxu0 %v1176_v34  ;;  %1128 = vmatprep.subr.bf16.mxu1 %v1411_v30 }
  0x4c   :  { %1110 = vmatprep.subr.bf16.mxu0 %v1411_v30  ;;  %p1373_p0 = por %p1372_p13, %p1371_p12 }
  0x4e   :  { %1129 = vmatpush3.bf16.msra.mxu1 %v1184_v61  ;;  %v1217_v61 = vld [vmem:[#allocation7 + $0xe0] ss:$8 sps:$4 sm:$0xff]   ;;  %p1374_p1 = pnand %p1373_p0, %p1367_p11 }
  0x4f   :  { %1111 = vmatpush3.bf16.msra.mxu0 %v1177_v38  ;;  %1130 = vmatprep.subr.bf16.mxu1 %v1411_v30 }
  0x50   :  { %1112 = vmatprep.subr.bf16.mxu0 %v1411_v30 }
  0x52   :  { %1131 = vmatpush3.bf16.msra.mxu1 %v1185_v63  ;;  %v1220_v63 = vld [vmem:[#allocation7 + $0xd0] ss:$8 sps:$4 sm:$0xff]  }
  0x53   :  { %1113 = vmatpush3.bf16.msra.mxu0 %v1178_v42  ;;  %1132 = vmatprep.subr.bf16.mxu1 %v1411_v30  ;;  %v1190_v42 = vld [vmem:[#allocation7 + $0x70] ss:$8 sps:$4 sm:$0xff]  }
  0x54   :  { %1114 = vmatprep.subr.bf16.mxu0 %v1411_v30 }
  0x57   :  { %1115 = vmatpush3.bf16.msra.mxu0 %v1179_v48  ;;  %v1201_v48 = vld [vmem:[#allocation7 + $0x44] ss:$8 sps:$4 sm:$0xff]  }
  0x58   :  { %1116 = vmatprep.subr.bf16.mxu0 %v1411_v30 }
  0x5b   :  { %1117 = vmatpush3.bf16.msra.mxu0 %v1180_v50  ;;  %v1204_v50 = vld [vmem:[#allocation7 + $0x34] ss:$8 sps:$4 sm:$0xff]  }
  0x5c   :  { %1118 = vmatprep.subr.bf16.mxu0 %v1411_v30 }
  0x5f   :  { %1119 = vmatpush3.bf16.msra.mxu0 %v1181_v51  ;;  %v1202_v51 = vld [vmem:[#allocation7 + $0x30] ss:$8 sps:$4 sm:$0xff]  }
  0xb3   :  { %v91_v1 = vpop.permute.xlu0 %90  ;;  %v99_v2 = vpop.permute.xlu1 %98 }
  0xb4   :  { %v93_v3 = vadd.f32 %v91_v1, %v1469_v0  ;;  %v158_v22 = vmax.f32 %v1469_v0, %v91_v1  ;;  %v1493_v23 = vmin.f32 %v1469_v0, %v91_v1  ;;  %v1186_v1 = vld [vmem:[#allocation5 + $0x58] sm:$0xff]  }
  0xb5   :  { %1133 = vmatpush3.bf16.msra.mxu1 %v1186_v1  ;;  %v1225_v1 = vld [vmem:[#allocation7 + $0xc4] ss:$8 sps:$4 sm:$0xff]  }
  0xb6   :  { %1134 = vmatprep.subr.bf16.mxu1 %v1411_v30 }
  0xb7   :  { %v95_v4 = vpop.permute.xlu0 %94  ;;  %v1479_v6 = vpop.permute.xlu1 %102 }
  0xb8   :  { %v97_v5 = vadd.f32 %v95_v4, %v93_v3 }
  0xba   :  { %v101_v7 = vadd.f32 %v99_v2, %v97_v5  ;;  %v1187_v2 = vld [vmem:[#allocation5 + $0x50] sm:$0xff]  }
  0xbb   :  { %1135 = vmatpush3.bf16.msra.mxu1 %v1187_v2  ;;  %v1223_v2 = vld [vmem:[#allocation7 + $0xc0] ss:$8 sps:$4 sm:$0xff]  }
  0xbc   :  { %v105_v8 = vadd.f32 %v1479_v6, %v101_v7  ;;  %1136 = vmatprep.subr.bf16.mxu1 %v1411_v30 }
  0xbe   :  { %v106_v9 = vmul.f32 0.2, %v105_v8 }
  0xc0   :  { %113 = vrot.lane.b32.xlu1 %v106_v9, %s1401_s12  ;;  %109 = vrot.lane.b32.xlu0 %v106_v9, %s1396_s22  ;;  %v172_v24 = vmax.f32 %v106_v9, 1e-10  ;;  %s1410_s22 = smov 20   ;;  %v107_v32 = vsub.f32 %v1469_v0, %v106_v9 }
  0xc2   :  { %1254 = vlog2.f32 %v172_v24  ;;  %v125_v33 = vmul.f32 %v107_v32, %v107_v32  ;;  %v424_v24 = vlaneseq }
  0xc4   :  { %121 = vrot.lane.b32.xlu1 %v106_v9, %s1404_s18  ;;  %117 = vrot.lane.b32.xlu0 %v106_v9, %s1409_s24 }
  0xcf   :  { %v1255_v25 = vpop.eup %1254 }
  0xd0   :  { %v174_v26 = vmul.f32 0.6931472, %v1255_v25  ;;  %v1528_v25 = vshrl.u32 %v424_v24, 7 }
  0xd2   :  { %v175_v27 = vmul.f32 %v174_v26, %v106_v9  ;;  %v1531_v26 = vsub.s32 1, %v1528_v25 }
  0xd4   :  { %v177_v28 = vsel %vm176_vm0, %v175_v27, 0.0  ;;  %v1534_v27 = vsub.s32 0, %v1528_v25  ;;  %v434_v32 = vrot.slane %v423_v29, %v1531_v26  ;;  %vm971_vm0 = vcmask 318464  }
 0x132   :  { %v114_v10 = vpop.permute.xlu1 %113  ;;  %v110_v11 = vpop.permute.xlu0 %109 }
 0x133   :  { %v116_v12 = vsub.f32 %v1469_v0, %v114_v10  ;;  %v112_v13 = vsub.f32 %v1469_v0, %v110_v11 }
 0x135   :  { %v132_v14 = vmul.f32 %v116_v12, %v116_v12  ;;  %v126_v15 = vmul.f32 %v112_v13, %v112_v13 }
 0x136   :  { %v122_v16 = vpop.permute.xlu1 %121  ;;  %v118_v17 = vpop.permute.xlu0 %117 }
 0x137   :  { %v124_v18 = vsub.f32 %v1469_v0, %v122_v16  ;;  %v120_v19 = vsub.f32 %v1469_v0, %v118_v17  ;;  %134 = vrot.lane.b32.xlu1 %v132_v14, %s1407_s23  ;;  %128 = vrot.lane.b32.xlu0 %v126_v15, %s1405_s2  ;;  %v1189_v15 = vld [vmem:[#allocation5 + $0x40] sm:$0xff]  }
 0x138   :  { %v224_v16 = vld [vmem:[#allocation10 + $0x5] ss:$0 sm:$0xff] }
 0x139   :  { %v144_v20 = vmul.f32 %v124_v18, %v124_v18  ;;  %v138_v21 = vmul.f32 %v120_v19, %v120_v19 }
 0x13b   :  { %146 = vrot.lane.b32.xlu1 %v144_v20, %s1408_s4  ;;  %140 = vrot.lane.b32.xlu0 %v138_v21, %s1406_s21 }
 0x13f   :  { %167 = vrot.lane.b32.xlu1 %v1493_v23, %s1407_s23  ;;  %160 = vrot.lane.b32.xlu0 %v158_v22, %s1407_s23 }
 0x143   :  { %181 = vrot.lane.b32.xlu1 %v106_v9, %s1410_s22 }
 0x15e   :  { %178 = vadd.xlane.f32.xlu0 %v177_v28  ;;  %v332_v28 = vld [vmem:[#allocation10 + $0x6] ss:$0 sm:$0xff] }
 0x1a9   :  { %v135_v35 = vpop.permute.xlu1 %134  ;;  %v129_v36 = vpop.permute.xlu0 %128 }
 0x1aa   :  { %v131_v37 = vadd.f32 %v129_v36, %v125_v33  ;;  %v427_v33 = vrot.slane %v423_v29, %v1534_v27  ;;  %v1243_v29 = vld [vmem:[#allocation8 + $0x28] sm:$0xff]  }
 0x1ac   :  { %v137_v39 = vadd.f32 %v135_v35, %v131_v37 }
 0x1ad   :  { %v141_v40 = vpop.permute.xlu0 %140  ;;  %v147_v43 = vpop.permute.xlu1 %146 }
 0x1ae   :  { %v143_v41 = vadd.f32 %v141_v40, %v137_v39  ;;  %v1416_v40 = vmov 1  }
 0x1af   :  { %1172 = vset.pattern.permute.xlu1 %v1416_v40 }
 0x1b0   :  { %v149_v44 = vadd.f32 %v147_v43, %v143_v41  ;;  %v1417_v41 = vmov 0   ;;  %v1192_v43 = vld [vmem:[#allocation7 + $0x74] ss:$8 sps:$4 sm:$0xff]  }
 0x1b1   :  { %v161_v45 = vpop.permute.xlu0 %160  ;;  %v168_v53 = vpop.permute.xlu1 %167  ;;  %1171 = vset.pattern.permute.xlu0 %v1417_v41  ;;  %701 = vmatprep.subr.bf16.mxu0 %v1192_v43 }
 0x1b2   :  { %v150_v46 = vmul.f32 0.25, %v149_v44  ;;  %v163_v47 = vmax.f32 %v158_v22, %v161_v45  ;;  %v170_v58 = vmin.f32 %v1493_v23, %v168_v53  ;;  %v1195_v44 = vld [vmem:[#allocation7 + $0x64] ss:$8 sps:$4 sm:$0xff]   ;;  %v1193_v45 = vld [vmem:[#allocation7 + $0x60] ss:$8 sps:$4 sm:$0xff]  }
 0x1b3   :  { %v1205_v53 = vld [vmem:[#allocation7 + $0x20] ss:$8 sps:$4 sm:$0xff]  }
 0x1b4   :  { %1256 = vrsqrt.f32 %v150_v46  ;;  %v164_v49 = vmax.f32 %v163_v47, %v1479_v6  ;;  %vm153_vm2 = vcmp.eq.f32.partialorder %v150_v46, inf  ;;  %v156_v56 = vand.u32 2147483648, %v150_v46  ;;  %v1196_v47 = vld [vmem:[#allocation7 + $0x50] ss:$8 sps:$4 sm:$0xff]  }
 0x1b5   :  { %vm155_vm3 = vcmp.eq.f32.partialorder %v150_v46, 0.0  ;;  %v171_v62 = vmin.f32 %v170_v58, %v1479_v6  ;;  %v182_v3 = vpop.permute.xlu1 %181  ;;  %v1216_v58 = vld [vmem:[#allocation7 + $0xf4] ss:$8 sps:$4 sm:$0xff]  }
 0x1b6   :  { %189 = vrot.lane.b32.xlu1 %v164_v49, %s1412_s25  ;;  %v197_v5 = vsel %vm196_vm4, %v1469_v0, %v182_v3  ;;  %v1188_v0 = vld [vmem:[#allocation5 + $0x48] sm:$0xff]   ;;  %v1228_v3 = vld [vmem:[#allocation7 + $0xb4] ss:$8 sps:$4 sm:$0xff]  }
 0x1b7   :  { %1137 = vmatpush3.bf16.msra.mxu1 %v1188_v0  ;;  %v1199_v49 = vld [vmem:[#allocation7 + $0x40] ss:$8 sps:$4 sm:$0xff]  }
 0x1b8   :  { %1138 = vmatprep.subr.bf16.mxu1 %v1411_v30 }
 0x1bb   :  { %1139 = vmatpush3.bf16.msra.mxu1 %v1189_v15  ;;  %v1234_v15 = vld [vmem:[#allocation7 + $0x94] ss:$8 sps:$4 sm:$0xff]  }
 0x1c1   :  { %v1257_v52 = vpop.eup %1256 }
 0x1c2   :  { %v152_v55 = vmul.f32 %v1257_v52, %v150_v46  ;;  %v1207_v52 = vld [vmem:[#allocation7 + $0x24] ss:$8 sps:$4 sm:$0xff]  }
 0x1c4   :  { %v154_v59 = vsel %vm153_vm2, %v150_v46, %v152_v55  ;;  %v1198_v46 = vld [vmem:[#allocation7 + $0x54] ss:$8 sps:$4 sm:$0xff]   ;;  %v1208_v55 = vld [vmem:[#allocation7 + $0x10] ss:$8 sps:$4 sm:$0xff]  }
 0x1c5   :  { %v157_v60 = vsel %vm155_vm3, %v156_v56, %v154_v59  ;;  %v1213_v56 = vld [vmem:[#allocation7 + $0x4] ss:$8 sps:$4 sm:$0xff]   ;;  %v1214_v59 = vld [vmem:[#allocation7 + $0xf0] ss:$8 sps:$4 sm:$0xff]   ;;  %vm975_vm3 = vcmask 523264  }
 0x1c6   :  { %185 = vrot.lane.b32.xlu1 %v157_v60, %s1414_s26  ;;  %v1219_v60 = vld [vmem:[#allocation7 + $0xe4] ss:$8 sps:$4 sm:$0xff]  }
 0x1ca   :  { %193 = vrot.lane.b32.xlu1 %v171_v62, %s1415_s27  ;;  %v1222_v62 = vld [vmem:[#allocation7 + $0xd4] ss:$8 sps:$4 sm:$0xff]  }
 0x1e7   :  { %v179_v7 = vpop.xlane.xlu0 %178 }
 0x1e8   :  { %v180_v9 = vsub.f32 0.0, %v179_v7  ;;  %v440_v7 = vld [vmem:[#allocation10 + $0x7] ss:$0 sm:$0xff] }
 0x228   :  { %v190_v4 = vpop.permute.xlu1 %189 }
 0x238   :  { %v186_v6 = vpop.permute.xlu1 %185 }
 0x239   :  { %v199_v8 = vsel %vm198_vm5, %v197_v5, %v186_v6  ;;  %v1231_v5 = vld [vmem:[#allocation7 + $0xa4] ss:$8 sps:$4 sm:$0xff]   ;;  %v1229_v6 = vld [vmem:[#allocation7 + $0xa0] ss:$8 sps:$4 sm:$0xff]  }
 0x23a   :  { %v201_v10 = vsel %vm200_vm6, %v199_v8, %v190_v4  ;;  %v1226_v4 = vld [vmem:[#allocation7 + $0xb0] ss:$8 sps:$4 sm:$0xff]  }
 0x23c   :  { %v194_v11 = vpop.permute.xlu1 %193 }
 0x23d   :  { %v203_v12 = vsel %vm202_vm7, %v201_v10, %v194_v11 }
 0x23e   :  { %v1520_v13 = vsel %vm204_vm8, %v203_v12, %v180_v9 }
 0x23f   :  { %v1004_v14 = vpack.c.bf16 %v1520_v13, %v1520_v13 }
 0x241   :  { %1121 = vmatmul.mubr.msk.bf16.vlgmr.msra.gmra.mxu0 %vm1003_vm10, %v1004_v14 }
 0x242   :  { %702 = vmatpush1.bf16.msra.mxu0 %v1190_v42 }
 0x243   :  { %703 = vmatprep.subr.bf16.mxu0 %v1195_v44 }
 0x246   :  { %704 = vmatpush1.bf16.msra.mxu0 %v1193_v45 }
 0x247   :  { %705 = vmatprep.subr.bf16.mxu0 %v1198_v46 }
 0x24a   :  { %706 = vmatpush1.bf16.msra.mxu0 %v1196_v47 }
 0x24b   :  { %707 = vmatprep.subr.bf16.mxu0 %v1201_v48 }
 0x24e   :  { %708 = vmatpush1.bf16.msra.mxu0 %v1199_v49 }
 0x24f   :  { %709 = vmatprep.subr.bf16.mxu0 %v1204_v50 }
 0x252   :  { %710 = vmatpush1.bf16.msra.mxu0 %v1202_v51 }
 0x253   :  { %711 = vmatprep.subr.bf16.mxu0 %v1207_v52 }
 0x256   :  { %712 = vmatpush1.bf16.msra.mxu0 %v1205_v53 }
 0x257   :  { %713 = vmatprep.subr.bf16.mxu0 %v1210_v54 }
 0x25a   :  { %714 = vmatpush1.bf16.msra.mxu0 %v1208_v55 }
 0x25b   :  { %715 = vmatprep.subr.bf16.mxu0 %v1213_v56 }
 0x25e   :  { %716 = vmatpush1.bf16.msra.mxu0 %v1211_v57 }
 0x25f   :  { %717 = vmatprep.subr.bf16.mxu0 %v1216_v58 }
 0x262   :  { %718 = vmatpush2.bf16.msra.mxu0 %v1214_v59  ;;  %v1250_v59 = vld [vmem:[#allocation8 + $0x48] sm:$0xff]  }
 0x263   :  { %719 = vmatprep.subr.bf16.mxu0 %v1219_v60  ;;  %v1251_v60 = vld [vmem:[#allocation8 + $0x8] sm:$0xff]  }
 0x266   :  { %720 = vmatpush2.bf16.msra.mxu0 %v1217_v61  ;;  %v1252_v61 = vld [vmem:[#allocation8 + $0x40] sm:$0xff]  }
 0x267   :  { %721 = vmatprep.subr.bf16.mxu0 %v1222_v62  ;;  %v1253_v62 = vld [vmem:[#allocation8] sm:$0xff]  }
 0x26a   :  { %722 = vmatpush2.bf16.msra.mxu0 %v1220_v63  ;;  %v494_v63 = vld [vmem:[#allocation10 + $0x3] ss:$8 sm:$0x3] }
 0x26b   :  { %723 = vmatprep.subr.bf16.mxu0 %v1225_v1  ;;  %v534_v1 = vrot.slane %v494_v63, %v1534_v27 }
 0x26e   :  { %724 = vmatpush2.bf16.msra.mxu0 %v1223_v2  ;;  %v538_v2 = vrot.slane %v494_v63, %v1531_v26 }
 0x26f   :  { %725 = vmatprep.subr.bf16.mxu0 %v1228_v3 }
 0x272   :  { %726 = vmatpush2.bf16.msra.mxu0 %v1226_v4 }
 0x273   :  { %727 = vmatprep.subr.bf16.mxu0 %v1231_v5 }
 0x276   :  { %728 = vmatpush2.bf16.msra.mxu0 %v1229_v6 }
 0x277   :  { %729 = vmatprep.subr.bf16.mxu0 %v1234_v15  ;;  %v495_v15 = vld [vmem:[#allocation10 + $0x4] ss:$0 sm:$0xff] }
 0x301   :  { %v308_v17 = vpop.f32.mrf.mxu0 }
 0x302   :  { %v309_v18 = vadd.f32 %v308_v17, %v224_v16  ;;  %v1232_v17 = vld [vmem:[#allocation7 + $0x90] ss:$8 sps:$4 sm:$0xff]  }
 0x303   :  { %v1122_v19 = vpop.f32.mrf.mxu0  ;;  %730 = vmatpush2.bf16.msra.mxu0 %v1232_v17 }
 0x304   :  { %v314_v20 = vmax.f32 %v309_v18, 0.0  ;;  %v1237_v18 = vld [vmem:[#allocation7 + $0x84] ss:$8 sps:$4 sm:$0xff]   ;;  %v1235_v19 = vld [vmem:[#allocation7 + $0x80] ss:$8 sps:$4 sm:$0xff]  }
 0x305   :  { %v311_v21 = vpop.f32.mrf.mxu0  ;;  %731 = vmatprep.subr.bf16.mxu0 %v1237_v18 }
 0x306   :  { %v333_v22 = vpack.c.bf16 %v314_v20, %v314_v20  ;;  %v1238_v20 = vld [vmem:[#allocation8 + $0x78] sm:$0xff]  }
 0x307   :  { %v1123_v23 = vpop.f32.mrf.mxu0  ;;  %732 = vmatpush2.bf16.msra.mxu0 %v1235_v19  ;;  %v1239_v21 = vld [vmem:[#allocation8 + $0x38] sm:$0xff]   ;;  %1082 = vmatprep.subr.bf16.mxu1 %v1238_v20 }
 0x308   :  { %1141 = vmatmul.mubr.bf16.vlgmr.msra.gmra.mxu1 %v333_v22  ;;  %v1240_v22 = vld [vmem:[#allocation8 + $0x70] sm:$0xff]  }
 0x309   :  { %1083 = vmatpush3.bf16.msra.mxu1 %v1239_v21  ;;  %v1241_v23 = vld [vmem:[#allocation8 + $0x30] sm:$0xff]  }
 0x30a   :  { %1084 = vmatprep.subr.bf16.mxu1 %v1240_v22  ;;  %v932_v22 = vsub.s32 4, %v1528_v25 }
 0x30d   :  { %1085 = vmatpush3.bf16.msra.mxu1 %v1241_v23 }
 0x3c8   :  { %v416_v30 = vpop.f32.mrf.mxu1 }
 0x3c9   :  { %v417_v31 = vadd.f32 %v416_v30, %v332_v28  ;;  %v1242_v28 = vld [vmem:[#allocation8 + $0x68] sm:$0xff]   ;;  %v1244_v30 = vld [vmem:[#allocation8 + $0x60] sm:$0xff]  }
 0x3ca   :  { %v1142_v34 = vpop.f32.mrf.mxu1  ;;  %1086 = vmatprep.subr.bf16.mxu1 %v1242_v28 }
 0x3cb   :  { %v422_v35 = vmax.f32 %v417_v31, 0.0  ;;  %1087 = vmatpush3.bf16.msra.mxu1 %v1243_v29  ;;  %v1245_v31 = vld [vmem:[#allocation8 + $0x20] sm:$0xff]   ;;  %v1248_v34 = vld [vmem:[#allocation8 + $0x50] sm:$0xff]  }
 0x3cc   :  { %v419_v36 = vpop.f32.mrf.mxu1  ;;  %1088 = vmatprep.subr.bf16.mxu1 %v1244_v30 }
 0x3cd   :  { %v435_v37 = vmul.f32 %v434_v32, %v422_v35  ;;  %v428_v38 = vmul.f32 %v427_v33, %v422_v35  ;;  %v1246_v32 = vld [vmem:[#allocation8 + $0x58] sm:$0xff]   ;;  %v1249_v35 = vld [vmem:[#allocation8 + $0x10] sm:$0xff]   ;;  %v448_v36 = vld [vmem:[#allocation10] sm:$0x7] }
 0x3ce   :  { %v1143_v39 = vpop.f32.mrf.mxu1  ;;  %v1247_v33 = vld [vmem:[#allocation8 + $0x18] sm:$0xff]   ;;  %v458_v41 = vrot.slane %v448_v36, %v1534_v27 }
 0x3cf   :  { %436 = vadd.xlane.f32.xlu0 %v435_v37  ;;  %429 = vadd.xlane.f32.xlu1 %v428_v38  ;;  %v449_v37 = vld [vmem:[#allocation10 + $0x8] sm:$0x7]  ;;  %v483_v38 = vsub.s32 2, %v1528_v25  ;;  %v472_v39 = vrot.slane %v448_v36, %v1531_v26 }
 0x3d0   :  { %1089 = vmatpush3.bf16.msra.mxu1 %v1245_v31  ;;  %v462_v42 = vrot.slane %v449_v37, %v1534_v27  ;;  %v915_v27 = vld [vmem:[#allocation10 + $0x10] sm:$0x3c] }
 0x3d1   :  { %1090 = vmatprep.subr.bf16.mxu1 %v1246_v32  ;;  %v484_v44 = vrot.slane %v448_v36, %v483_v38  ;;  %v488_v46 = vrot.slane %v449_v37, %v483_v38  ;;  %v919_v21 = vrot.slane %v915_v27, %v483_v38  ;;  %v933_v31 = vrot.slane %v915_v27, %v932_v22 }
 0x3d2   :  { %v939_v32 = vsub.s32 5, %v1528_v25 }
 0x3d4   :  { %1091 = vmatpush3.bf16.msra.mxu1 %v1247_v33 }
 0x3d5   :  { %1092 = vmatprep.subr.bf16.mxu1 %v1248_v34  ;;  %v940_v34 = vrot.slane %v915_v27, %v939_v32 }
 0x3d8   :  { %1093 = vmatpush3.bf16.msra.mxu1 %v1249_v35 }
 0x3d9   :  { %1094 = vmatprep.subr.bf16.mxu1 %v1250_v59 }
 0x3dc   :  { %1095 = vmatpush3.bf16.msra.mxu1 %v1251_v60 }
 0x3dd   :  { %1096 = vmatprep.subr.bf16.mxu1 %v1252_v61 }
 0x3e0   :  { %1097 = vmatpush3.bf16.msra.mxu1 %v1253_v62 }
 0x458   :  { %v437_v8 = vpop.xlane.xlu0 %436  ;;  %v430_v9 = vpop.xlane.xlu1 %429 }
 0x459   :  { %v439_v10 = vsel %vm438_vm11, %v430_v9, %v437_v8 }
 0x45a   :  { %v441_v11 = vadd.f32 %v440_v7, %v439_v10 }
 0x45c   :  { %v1014_v12 = vmul.f32 -1.442695, %v441_v11 }
 0x45e   :  { %1258 = vpow2.f32 %v1014_v12 }
 0x46b   :  { %v1259_v14 = vpop.eup %1258 }
 0x46c   :  { %v445_v0 = vadd.f32 1.0, %v1259_v14 }
 0x46e   :  { %1260 = vrcp.f32 %v445_v0  ;;  %v925_v0 = vsub.s32 3, %v1528_v25 }
 0x470   :  { %v926_v20 = vrot.slane %v915_v27, %v925_v0 }
 0x47b   :  { %v1540_v16 = vpop.eup %1260 }
 0x47c   :  { %466 = vperm.xlu1 %1172, %v1540_v16   ;;  %452 = vperm.xlu0 %1171, %v1540_v16  }
 0x480   :  { %1173 = vset.pattern.permute.xlu0 %v1416_v40  ;;  %v476_v40 = vrot.slane %v449_v37, %v1531_v26 }
 0x4f7   :  { %v467_v43 = vpop.permute.xlu1 %466  ;;  %v453_v45 = vpop.permute.xlu0 %452 }
 0x4f8   :  { %v477_v47 = vmul.f32 %v472_v39, %v467_v43  ;;  %v478_v48 = vmul.f32 %v476_v40, %v467_v43  ;;  %v463_v49 = vmul.f32 %v458_v41, %v453_v45  ;;  %v464_v50 = vmul.f32 %v462_v42, %v453_v45  ;;  %v949_v40 = vld [vmem:[#allocation10 + $0x16] ss:$0 sm:$0xff] }
 0x4fa   :  { %v479_v51 = vadd.f32 %v477_v47, %v463_v49  ;;  %v480_v52 = vadd.f32 %v478_v48, %v464_v50  ;;  %v207_v49 = vsel %vm206_vm9, %v1520_v13, 0.0 }
 0x4fc   :  { %v489_v53 = vadd.f32 %v484_v44, %v479_v51  ;;  %v490_v54 = vadd.f32 %v488_v46, %v480_v52 }
 0x4fe   :  { %v491_v55 = vmax.f32 %v489_v53, 0.0  ;;  %v492_v56 = vmax.f32 %v490_v54, 0.0 }
 0x500   :  { %v528_v57 = vpack.c.bf16 %v491_v55, %v491_v55  ;;  %v529_v58 = vpack.c.bf16 %v492_v56, %v492_v56 }
 0x502   :  { %733 = vmatprep.mubr.bf16.mxu0 %v529_v58 }
 0x503   :  { %734 = vmatmul.mubr.bf16.vlgmr.msra.gmra.mxu0 %v528_v57 }
 0x5c3   :  { %v735_v3 = vpop.f32.mrf.mxu0 }
 0x5c4   :  { %v736_v4 = vadd.f32 %v735_v3, %v534_v1 }
 0x5c5   :  { %v737_v5 = vpop.f32.mrf.mxu0 }
 0x5c6   :  { %v738_v6 = vadd.f32 %v737_v5, %v538_v2  ;;  %v742_v7 = vmax.f32 %v736_v4, 0.0 }
 0x5c7   :  { %v739_v8 = vpop.f32.mrf.mxu0 }
 0x5c8   :  { %v743_v9 = vmax.f32 %v738_v6, 0.0  ;;  %v776_v12 = vpack.c.bf16 %v742_v7, %v742_v7 }
 0x5c9   :  { %v740_v10 = vpop.f32.mrf.mxu0 }
 0x5ca   :  { %v777_v11 = vpack.c.bf16 %v743_v9, %v743_v9 }
 0x5cc   :  { %906 = vmatprep.mubr.bf16.mxu1 %v777_v11 }
 0x5cd   :  { %907 = vmatmul.mubr.bf16.vlgmr.msra.gmra.mxu1 %v776_v12 }
 0x68d   :  { %v1098_v14 = vpop.f32.mrf.mxu1 }
 0x68f   :  { %v1099_v17 = vpop.f32.mrf.mxu1 }
 0x690   :  { %v1100_v18 = vadd.f32 %v1099_v17, %v1098_v14 }
 0x691   :  { %v1101_v26 = vpop.f32.mrf.mxu1 }
 0x692   :  { %v909_v19 = vadd.f32 %v1100_v18, %v495_v15 }
 0x693   :  { %v1102_v23 = vpop.f32.mrf.mxu1 }
 0x694   :  { %v914_v28 = vmax.f32 %v909_v19, 0.0  ;;  %v1063_v44 = vmul.f32 -1.442695, %v909_v19 }
 0x696   :  { %v927_v29 = vmul.f32 %v926_v20, %v914_v28  ;;  %v920_v30 = vmul.f32 %v919_v21, %v914_v28  ;;  %v934_v33 = vmul.f32 %v933_v31, %v914_v28  ;;  %v941_v35 = vmul.f32 %v940_v34, %v914_v28 }
 0x697   :  { %1262 = vpow2.f32 %v1063_v44 }
 0x698   :  { %928 = vadd.xlane.f32.xlu0 %v927_v29  ;;  %921 = vadd.xlane.f32.xlu1 %v920_v30 }
 0x69c   :  { %935 = vadd.xlane.f32.xlu1 %v934_v33 }
 0x6a0   :  { %942 = vadd.xlane.f32.xlu1 %v941_v35 }
 0x6a4   :  { %v1263_v45 = vpop.eup %1262 }
 0x6a5   :  { %v959_v46 = vadd.f32 1.0, %v1263_v45 }
 0x6a7   :  { %1264 = vrcp.f32 %v959_v46 }
 0x6ae   :  { %963 = vrot.lane.b32.xlu0 %v1540_v16, %s1418_s28  ;;  %v952_v16 = vand.u32 127, %v424_v24 }
 0x6b0   :  { %vm953_vm14 = vcmp.ge.s32.totalorder %v952_v16, 64  ;;  %vm954_vm15 = vcmp.lt.s32.totalorder %v952_v16, 100 }
 0x6b1   :  { %vm955_vm2 = vmand %vm953_vm14, %vm954_vm15 }
 0x6b4   :  { %v1265_v48 = vpop.eup %1264 }
 0x6b5   :  { %v962_v54 = vsel %vm955_vm2, %v1265_v48, %v909_v19 }
 0x721   :  { %v922_v36 = vpop.xlane.xlu1 %921  ;;  %v929_v37 = vpop.xlane.xlu0 %928 }
 0x722   :  { %v944_v39 = vsel %vm438_vm11, %v922_v36, %v929_v37 }
 0x725   :  { %v936_v38 = vpop.xlane.xlu1 %935  ;;  %v964_v47 = vpop.permute.xlu0 %963 }
 0x726   :  { %v946_v41 = vsel %vm945_vm12, %v944_v39, %v936_v38  ;;  %v970_v50 = vsel %vm206_vm9, %v207_v49, %v964_v47 }
 0x729   :  { %v943_v25 = vpop.xlane.xlu1 %942 }
 0x72a   :  { %v948_v42 = vsel %vm947_vm13, %v946_v41, %v943_v25 }
 0x72b   :  { %v950_v43 = vadd.f32 %v949_v40, %v948_v42 }
 0x72d   :  { %967 = vrot.lane.b32.xlu1 %v950_v43, %s1419_s29 }
 0x79f   :  { %v968_v51 = vpop.permute.xlu1 %967 }
 0x7a0   :  { %v972_v52 = vsel %vm971_vm0, %v970_v50, %v968_v51 }
 0x7a1   :  { %v974_v53 = vsel %vm973_vm1, %v972_v52, 0.0 }
 0x7a2   :  { %v976_v24 = vsel %vm975_vm3, %v974_v53, %v962_v54 }
 0x7a3   :  { %977 = vst [vmem:[#allocation11] sm:$0xff] %v976_v24 }
 0x7a4   :  { %1377 = shalt.err (!%p1374_p1)
}
 0x7a5   :  { %987 = dma.vmem_to_hbm [thread:$0]  %s985_s6, 128, %s1569_s5, [#allocation4]  }
 0x7a6   :  { %1392 = dma.done.wait [#allocation4], 128  }
 0x7a7   :  { %1393 = vsyncadd [#allocation4], 4294967168 }
 0x7a8   :  { %991 = vsyncpa [#allocation3], 1 }
 0x7a9   :  { %992 = vsyncpa [#allocation6], 1 }
 0x7aa   :  { %993 = vsyncpa [#allocation9], 1 }
 0x7ab   :  { %994 = vsyncpa [#allocation4], 1 }

</bundles_post_ra>
